<compile_context>
chip_gen: v5e
topology: v5e:2x2
jax: 0.10.0
libtpu: 0.0.40
codegen_flags: <defaults>
</compile_context>

<pallas_src>
import jax
import jax.numpy as jnp
from jax.experimental import pallas as pl
from jax.experimental.pallas import tpu as pltpu

_NEG_INF = -1e30   # finite "-inf" for padded softmax lanes
_SUB = 16          # bf16 sublane-packing granularity for batch tiles


def _round_up(n, m):
    return ((n + m - 1) // m) * m


def _mlp_kernel(x_ref, w1_ref, b1_ref, w2_ref, b2_ref, w3_ref, b3_ref, o_ref):
    # x arrives bf16 (cast at the pallas_call boundary); elementwise math in f32.

    # fc1 + sigmoid (bf16 MXU operands, f32 accumulation)
    h1 = jnp.dot(x_ref[...], w1_ref[...],
                 preferred_element_type=jnp.float32) + b1_ref[...]
    h1 = jax.nn.sigmoid(h1)

    # fc2 + sigmoid
    h2 = jnp.dot(h1.astype(jnp.bfloat16), w2_ref[...],
                 preferred_element_type=jnp.float32) + b2_ref[...]
    h2 = jax.nn.sigmoid(h2)

    # fc3 + softmax over the feature axis.
    # Padded output lanes carry a -1e30 bias, so they contribute ~0 to the
    # max/sum — no explicit masking needed.
    logits = jnp.dot(h2.astype(jnp.bfloat16), w3_ref[...],
                     preferred_element_type=jnp.float32) + b3_ref[...]
    m = jnp.max(logits, axis=-1, keepdims=True)
    e = jnp.exp(logits - m)
    denom = jnp.sum(e, axis=-1, keepdims=True)
    o_ref[...] = (e * pl.reciprocal(denom, approx=True)).astype(o_ref.dtype)


def net_forward(x, padded_params, k, *, block_b=512):
    """Fused 3-layer MLP; batch tiled over a parallel grid axis."""
    w1, b1, w2, b2, w3, b3 = padded_params
    B, d = x.shape
    dp = w1.shape[0]
    kp = w3.shape[1]

    # Batch tile: as large as possible (up to block_b ~ HBM-roofline sweet spot)
    # while still giving the grid >= 2 steps whenever B > 16, so v7x's two
    # TensorCores both get work. Rounded to 16 sublanes for bf16 packing.
    tb = min(block_b, max(_SUB, _round_up((B + 1) // 2, _SUB)))
    B_pad = _round_up(B, tb)

    # bf16 x at the boundary: halves the x HBM read (kernel needs bf16 anyway).
    xp = jnp.pad(x.astype(jnp.bfloat16), ((0, B_pad - B), (0, dp - d)))

    # Constant index maps -> weights/biases are fetched once and stay resident.
    full2d = lambda a: pl.BlockSpec(a.shape, lambda i: (0, 0))

    out = pl.pallas_call(
        _mlp_kernel,
        out_shape=jax.ShapeDtypeStruct((B_pad, kp), jnp.bfloat16),
        grid=(B_pad // tb,),
        in_specs=[
            pl.BlockSpec((tb, dp), lambda i: (i, 0)),   # x: tiled over batch
            full2d(w1), full2d(b1),                     # weights resident
            full2d(w2), full2d(b2),
            full2d(w3), full2d(b3),
        ],
        out_specs=pl.BlockSpec((tb, kp), lambda i: (i, 0)),
        compiler_params=pltpu.CompilerParams(
            dimension_semantics=("parallel",),
        ),
    )(xp, w1, b1, w2, b2, w3, b3)

    return out[:B, :k].astype(jnp.float32)


def init_params(key, d, d1=300, d2=200, k=10):
    """PyTorch-Linear-style init; weights stored (in, out) = W^T, f32, unpadded."""
    ks = jax.random.split(key, 6)

    def linear(kw, kb, fan_in, fan_out):
        bound = 1.0 / jnp.sqrt(jnp.float32(fan_in))
        w = jax.random.uniform(kw, (fan_in, fan_out), jnp.float32, -bound, bound)
        b = jax.random.uniform(kb, (1, fan_out), jnp.float32, -bound, bound)
        return w, b

    w1, b1 = linear(ks[0], ks[1], d, d1)
    w2, b2 = linear(ks[2], ks[3], d1, d2)
    w3, b3 = linear(ks[4], ks[5], d2, k)
    return (w1, b1, w2, b2, w3, b3)


def prepare_params(params):
    """One-time prep: pad all feature dims to 128; weights bf16, biases f32.

    Padding rules for correctness:
      * all padded weight columns / bias lanes are zero,
      * W2/W3 padded input ROWS are zero (so the padded sigmoid(0)=0.5 hidden
        lanes contribute nothing),
      * b3 padded output lanes are -1e30 so padded logits vanish in softmax.
    """
    w1, b1, w2, b2, w3, b3 = params
    d, d1 = w1.shape
    d2 = w2.shape[1]
    k = w3.shape[1]
    dp, d1p, d2p, kp = (_round_up(v, 128) for v in (d, d1, d2, k))

    def pad_w(w, rp, cp):
        r, c = w.shape
        return jnp.pad(w, ((0, rp - r), (0, cp - c))).astype(jnp.bfloat16)

    def pad_b(b, cp, fill=0.0):
        return jnp.pad(b.astype(jnp.float32), ((0, 0), (0, cp - b.shape[1])),
                       constant_values=fill)

    w1p = pad_w(w1, dp, d1p)
    w2p = pad_w(w2, d1p, d2p)           # padded input rows are zero
    w3p = pad_w(w3, d2p, kp)            # padded input rows are zero
    b1p = pad_b(b1, d1p)
    b2p = pad_b(b2, d2p)
    b3p = pad_b(b3, kp, fill=_NEG_INF)  # mask padded softmax lanes
    return (w1p, b1p, w2p, b2p, w3p, b3p)


def net_reference(x, params):
    """Pure-JAX f32 reference (unpadded) for correctness checking."""
    w1, b1, w2, b2, w3, b3 = params
    h1 = jax.nn.sigmoid(x @ w1 + b1)
    h2 = jax.nn.sigmoid(h1 @ w2 + b2)
    return jax.nn.softmax(h2 @ w3 + b3, axis=1)


if __name__ == "__main__":
    key = jax.random.PRNGKey(0)
    k_x, k_p = jax.random.split(key)

    B, d = 32, 32                     # small batch (2 grid steps), small input dim
    d1, d2, k = 300, 200, 10          # module defaults
    x = jax.random.normal(k_x, (B, d), dtype=jnp.float32)

    params = init_params(k_p, d, d1, d2, k)
    padded_params = prepare_params(params)

    out = net_forward(x, padded_params, k)
    out = jax.block_until_ready(out)

    ref = net_reference(x, params)

    # sanity: shape, softmax rows sum to ~1, matches f32 reference to bf16 tol
    assert out.shape == (B, k)
    assert jnp.allclose(jnp.sum(out, axis=1), 1.0, atol=1e-2)
    assert jnp.allclose(out, ref, atol=5e-2)

    print("KERNEL_OK")
</pallas_src>

<mosaic_0001>
module attributes {stable_mosaic.version = 11 : i64} {
  func.func @_mlp_kernel(%arg0: i32, %arg1: memref<16x128xbf16, #tpu.memory_space<vmem>>, %arg2: memref<128x384xbf16, #tpu.memory_space<vmem>>, %arg3: memref<1x384xf32, #tpu.memory_space<vmem>>, %arg4: memref<384x256xbf16, #tpu.memory_space<vmem>>, %arg5: memref<1x256xf32, #tpu.memory_space<vmem>>, %arg6: memref<256x128xbf16, #tpu.memory_space<vmem>>, %arg7: memref<1x128xf32, #tpu.memory_space<vmem>>, %arg8: memref<16x128xbf16, #tpu.memory_space<vmem>>) attributes {dimension_semantics = [#tpu.dimension_semantics<parallel>], iteration_bounds = array<i64: 2>, scalar_prefetch = 0 : i64, scratch_operands = 0 : i64, tpu.core_type = #tpu.core_type<tc>, window_params = [{transform_indices = @transform_0, window_bounds = array<i64: 16, 128>}, {pipeline_mode = #tpu.pipeline_mode<synchronous>, transform_indices = @transform_1, window_bounds = array<i64: 128, 384>}, {pipeline_mode = #tpu.pipeline_mode<synchronous>, transform_indices = @transform_2, window_bounds = array<i64: 1, 384>}, {pipeline_mode = #tpu.pipeline_mode<synchronous>, transform_indices = @transform_3, window_bounds = array<i64: 384, 256>}, {pipeline_mode = #tpu.pipeline_mode<synchronous>, transform_indices = @transform_4, window_bounds = array<i64: 1, 256>}, {pipeline_mode = #tpu.pipeline_mode<synchronous>, transform_indices = @transform_5, window_bounds = array<i64: 256, 128>}, {pipeline_mode = #tpu.pipeline_mode<synchronous>, transform_indices = @transform_6, window_bounds = array<i64: 1, 128>}, {transform_indices = @transform_7, window_bounds = array<i64: 16, 128>}]} {
    %c0 = arith.constant 0 : index
    %c0_0 = arith.constant 0 : index
    %0 = vector.load %arg1[%c0, %c0_0] : memref<16x128xbf16, #tpu.memory_space<vmem>>, vector<16x128xbf16>
    %c0_1 = arith.constant 0 : index
    %c0_2 = arith.constant 0 : index
    %1 = vector.load %arg2[%c0_1, %c0_2] : memref<128x384xbf16, #tpu.memory_space<vmem>>, vector<128x384xbf16>
    %cst = arith.constant dense<0.000000e+00> : vector<16x384xf32>
    %2 = tpu.matmul %0, %1, %cst {dimension_numbers = #tpu.dot_dimension_numbers<[1], [0], [0], [1], [0, 0, 1, 1], [], []>} : vector<16x128xbf16>, vector<128x384xbf16>, vector<16x384xf32> -> vector<16x384xf32>
    %c0_3 = arith.constant 0 : index
    %c0_4 = arith.constant 0 : index
    %3 = vector.load %arg3[%c0_3, %c0_4] : memref<1x384xf32, #tpu.memory_space<vmem>>, vector<1x384xf32>
    %4 = vector.broadcast %3 : vector<1x384xf32> to vector<16x384xf32>
    %5 = arith.addf %2, %4 : vector<16x384xf32>
    %6 = arith.negf %5 : vector<16x384xf32>
    %7 = math.exp %6 : vector<16x384xf32>
    %cst_5 = arith.constant 1.000000e+00 : f32
    %8 = vector.broadcast %cst_5 : f32 to vector<16x384xf32>
    %9 = arith.addf %8, %7 : vector<16x384xf32>
    %10 = arith.divf %8, %9 : vector<16x384xf32>
    %11 = arith.truncf %10 : vector<16x384xf32> to vector<16x384xbf16>
    %c0_6 = arith.constant 0 : index
    %c0_7 = arith.constant 0 : index
    %12 = vector.load %arg4[%c0_6, %c0_7] : memref<384x256xbf16, #tpu.memory_space<vmem>>, vector<384x256xbf16>
    %cst_8 = arith.constant dense<0.000000e+00> : vector<16x256xf32>
    %13 = tpu.matmul %11, %12, %cst_8 {dimension_numbers = #tpu.dot_dimension_numbers<[1], [0], [0], [1], [0, 0, 1, 1], [], []>} : vector<16x384xbf16>, vector<384x256xbf16>, vector<16x256xf32> -> vector<16x256xf32>
    %c0_9 = arith.constant 0 : index
    %c0_10 = arith.constant 0 : index
    %14 = vector.load %arg5[%c0_9, %c0_10] : memref<1x256xf32, #tpu.memory_space<vmem>>, vector<1x256xf32>
    %15 = vector.broadcast %14 : vector<1x256xf32> to vector<16x256xf32>
    %16 = arith.addf %13, %15 : vector<16x256xf32>
    %17 = arith.negf %16 : vector<16x256xf32>
    %18 = math.exp %17 : vector<16x256xf32>
    %cst_11 = arith.constant 1.000000e+00 : f32
    %19 = vector.broadcast %cst_11 : f32 to vector<16x256xf32>
    %20 = arith.addf %19, %18 : vector<16x256xf32>
    %21 = arith.divf %19, %20 : vector<16x256xf32>
    %22 = arith.truncf %21 : vector<16x256xf32> to vector<16x256xbf16>
    %c0_12 = arith.constant 0 : index
    %c0_13 = arith.constant 0 : index
    %23 = vector.load %arg6[%c0_12, %c0_13] : memref<256x128xbf16, #tpu.memory_space<vmem>>, vector<256x128xbf16>
    %cst_14 = arith.constant dense<0.000000e+00> : vector<16x128xf32>
    %24 = tpu.matmul %22, %23, %cst_14 {dimension_numbers = #tpu.dot_dimension_numbers<[1], [0], [0], [1], [0, 0, 1, 1], [], []>} : vector<16x256xbf16>, vector<256x128xbf16>, vector<16x128xf32> -> vector<16x128xf32>
    %c0_15 = arith.constant 0 : index
    %c0_16 = arith.constant 0 : index
    %25 = vector.load %arg7[%c0_15, %c0_16] : memref<1x128xf32, #tpu.memory_space<vmem>>, vector<1x128xf32>
    %26 = vector.broadcast %25 : vector<1x128xf32> to vector<16x128xf32>
    %27 = arith.addf %24, %26 : vector<16x128xf32>
    %cst_17 = arith.constant dense<0xFF800000> : vector<16xf32>
    %28 = vector.multi_reduction <maximumf>, %27, %cst_17 [1] : vector<16x128xf32> to vector<16xf32>
    %29 = vector.shape_cast %28 : vector<16xf32> to vector<16x1xf32>
    %30 = vector.broadcast %29 : vector<16x1xf32> to vector<16x128xf32>
    %31 = arith.subf %27, %30 : vector<16x128xf32>
    %32 = math.exp %31 : vector<16x128xf32>
    %cst_18 = arith.constant dense<0.000000e+00> : vector<16xf32>
    %33 = vector.multi_reduction <add>, %32, %cst_18 [1] : vector<16x128xf32> to vector<16xf32>
    %34 = vector.shape_cast %33 : vector<16xf32> to vector<16x1xf32>
    %35 = tpu.reciprocal %34 {approx = true} : vector<16x1xf32> -> vector<16x1xf32>
    %36 = vector.broadcast %35 : vector<16x1xf32> to vector<16x128xf32>
    %37 = arith.mulf %32, %36 : vector<16x128xf32>
    %38 = arith.truncf %37 : vector<16x128xf32> to vector<16x128xbf16>
    %c0_19 = arith.constant 0 : index
    %c0_20 = arith.constant 0 : index
    %39 = vector.load %arg8[%c0_19, %c0_20] : memref<16x128xbf16, #tpu.memory_space<vmem>>, vector<16x128xbf16>
    tpu.vector_store %arg8[%c0_19, %c0_20], %38 {strides = array<i32>} : memref<16x128xbf16, #tpu.memory_space<vmem>>, vector<16x128xbf16>,
    return
  }
  func.func @transform_0(%arg0: i32) -> (i32, i32) {
    %c0_i32 = arith.constant 0 : i32
    %c0_i32_0 = arith.constant 0 : i32
    return %arg0, %c0_i32 : i32, i32
  }
  func.func @transform_1(%arg0: i32) -> (i32, i32) {
    %c0_i32 = arith.constant 0 : i32
    %c0_i32_0 = arith.constant 0 : i32
    %c0_i32_1 = arith.constant 0 : i32
    return %c0_i32, %c0_i32_0 : i32, i32
  }
  func.func @transform_2(%arg0: i32) -> (i32, i32) {
    %c0_i32 = arith.constant 0 : i32
    %c0_i32_0 = arith.constant 0 : i32
    %c0_i32_1 = arith.constant 0 : i32
    return %c0_i32, %c0_i32_0 : i32, i32
  }
  func.func @transform_3(%arg0: i32) -> (i32, i32) {
    %c0_i32 = arith.constant 0 : i32
    %c0_i32_0 = arith.constant 0 : i32
    %c0_i32_1 = arith.constant 0 : i32
    return %c0_i32, %c0_i32_0 : i32, i32
  }
  func.func @transform_4(%arg0: i32) -> (i32, i32) {
    %c0_i32 = arith.constant 0 : i32
    %c0_i32_0 = arith.constant 0 : i32
    %c0_i32_1 = arith.constant 0 : i32
    return %c0_i32, %c0_i32_0 : i32, i32
  }
  func.func @transform_5(%arg0: i32) -> (i32, i32) {
    %c0_i32 = arith.constant 0 : i32
    %c0_i32_0 = arith.constant 0 : i32
    %c0_i32_1 = arith.constant 0 : i32
    return %c0_i32, %c0_i32_0 : i32, i32
  }
  func.func @transform_6(%arg0: i32) -> (i32, i32) {
    %c0_i32 = arith.constant 0 : i32
    %c0_i32_0 = arith.constant 0 : i32
    %c0_i32_1 = arith.constant 0 : i32
    return %c0_i32, %c0_i32_0 : i32, i32
  }
  func.func @transform_7(%arg0: i32) -> (i32, i32) {
    %c0_i32 = arith.constant 0 : i32
    %c0_i32_0 = arith.constant 0 : i32
    return %arg0, %c0_i32 : i32, i32
  }
}

</mosaic_0001>

<bundles_post_ra>
// kernel: tpu_custom_call.1
= control target key start
LH: loop header
LB: loop body
LE: loop exit
PB: predicated region body
PF: predicated region fallthrough
CT: control target
= control target key end

     0   :  { %s2690_s0 = inlined_call_operand.hbm [shape: bf16[32,128], index: 0, kind: input, shape index: {}]   ;;  %s2691_s1 = inlined_call_operand.hbm [shape: bf16[128,384], index: 1, kind: input, shape index: {}]   ;;  %s2692_s2 = inlined_call_operand.hbm [shape: f32[1,384], index: 2, kind: input, shape index: {}]   ;;  %s2693_s3 = inlined_call_operand.hbm [shape: bf16[384,256], index: 3, kind: input, shape index: {}]   ;;  %s2694_s4 = inlined_call_operand.vmem [shape: f32[1,256], index: 4, kind: input, shape index: {}]   ;;  %s2695_s5 = inlined_call_operand.hbm [shape: bf16[256,128], index: 5, kind: input, shape index: {}]   ;;  %s2696_s6 = inlined_call_operand.vmem [shape: f32[1,128], index: 6, kind: input, shape index: {}]   ;;  %s2697_s7 = inlined_call_operand.hbm [shape: bf16[32,128], index: 7, kind: output, shape index: {}]  }
   0x1   :  { %2700 = sst [smem:[#allocation16_spill]] %s2691_s1 }
   0x2   :  { %12 = vsyncpa [#allocation3], 0 }
   0x3   :  { %14 = vsyncpa [#allocation3 + $0x1], 0 }
   0x4   :  { %15 = vsyncpa [#allocation6], 0 }
   0x5   :  { %16 = vsyncpa [#allocation9], 0 }
   0x6   :  { %17 = vsyncpa [#allocation4], 0 }
   0x7   :  { %19 = vsyncpa [#allocation4 + $0x1], 0  ;;  %s2371_s24 = smov 0   ;;  %s2373_s25 = smov 0  }
   0x8   :  { %s2375_s26 = smov 0   ;;  %s2377_s27 = smov 0  }
   0x9 LB: > { %s2392_s28 = sadd.s32 4294967295, %s2317_s27   ;;  %s1465_s29 = sadd.s32 4294967294, %s2317_s27   ;;  %s2317_s27 = sphi %s2377_s27, %s2728_s27   ;;  %s2313_s26 = sphi %s2375_s26, %s2727_s26   ;;  %s2309_s25 = sphi %s2373_s25, %s2726_s25   ;;  %s2305_s24 = sphi %s2371_s24, %s2725_s24  }
   0xa   : > { %p45_p0 = scmp.ne.s32.totalorder %s2309_s25, %s2305_s24  ;;  %p46_p1 = scmp.eq.s32.totalorder %s2392_s28, 0 }
   0xb   : > { %p195_p2 = scmp.eq.s32.totalorder %s2392_s28, 1  ;;  %p201_p3 = scmp.eq.s32.totalorder %s1465_s29, 1 }
   0xc   : > { %p2401_p4 = por %p46_p1, %p45_p0  ;;  %p1466_p5 = scmp.ge.s32.totalorder %s2317_s27, 1 }
   0xd   : > { %p2406_p6 = por %p201_p3, %p45_p0  ;;  %p208_p7 = scmp.lt.s32.totalorder %s2317_s27, 3 }
   0xe   : > { %s2703_s1 = sld [smem:[#allocation16_spill]]  ;;  %s2319_s13 = smov [#allocation5]  }
   0xf   : > { %p2414_p8 = pnand %p1466_p5, %p208_p7  ;;  %s221_s14 = sshll.u32 %s2319_s13, 4  ;;  %s222_s14 = int_to_ptr.vmem [resolvable:$true] %s221_s14 }
  0x10   : > { %s245_s18 = sshll.u32 %s2693_s3, 4  ;;  %s2320_s19 = smov 192   ;;  %s246_s18 = int_to_ptr.hbm [resolvable:$true] %s245_s18 }
  0x11   : > { %p1969_p9 = pneg %p2414_p8  ;;  %s2321_s20 = smov 12  }
  0x12   : > { %s2322_s21 = smov [#allocation8]   ;;  %s2323_s23 = smov 128  }
  0x13   : > { %p2422_p10 = pnand %p1969_p9, %p46_p1  ;;  %s247_s22 = sshll.u32 %s2322_s21, 4  ;;  %s248_s22 = int_to_ptr.vmem [resolvable:$true] %s247_s22 }
  0x14   : > { %s219_s11 = sshll.u32 %s2703_s1, 4  ;;  %s2324_s29 = smov 8   ;;  %s220_s11 = int_to_ptr.hbm [resolvable:$true] %s219_s11 }
  0x15   : > { %1972 = dma.hbm_to_vmem [thread:$0]  (!%p2422_p10), %s220_s11, 3072, %s222_s14, [#allocation6], %s2320_s19, %s2320_s19, %s2321_s20  }
  0x16   : > { %1978 = dma.hbm_to_vmem [thread:$0]  (!%p2422_p10), %s246_s18, 6144, %s248_s22, [#allocation9], %s2323_s23, %s2323_s23, %s2324_s29  }
  0x17   : > { %s234_s13 = sshll.u32 %s2692_s2, 4  ;;  %s2325_s16 = smov [#allocation7]   ;;  %s235_s13 = int_to_ptr.hbm [resolvable:$true] %s234_s13 }
  0x18   : > { %s236_s11 = sshll.u32 %s2325_s16, 4  ;;  %s262_s19 = sshll.u32 %s2695_s5, 4  ;;  %s237_s11 = int_to_ptr.vmem [resolvable:$true] %s236_s11  ;;  %s263_s19 = int_to_ptr.hbm [resolvable:$true] %s262_s19 }
  0x19   : > { %1975 = dma.hbm_to_vmem [thread:$0]  (!%p2422_p10), %s235_s13, 48, %s237_s11, [#allocation6]  }
  0x1a   : > { %s2326_s18 = smov [#allocation10]   ;;  %s2698_s21 = smov 64  }
  0x1b   : > { %s264_s20 = sshll.u32 %s2326_s18, 4  ;;  %s2699_s22 = smov 4   ;;  %s265_s20 = int_to_ptr.vmem [resolvable:$true] %s264_s20 }
  0x1c   : > { %1981 = dma.hbm_to_vmem [thread:$0]  (!%p2422_p10), %s263_s19, 2048, %s265_s20, [#allocation9], %s2698_s21, %s2698_s21, %s2699_s22  }
  0x1d   : > { %s2448_s23 = sadd.s32 1, %s2317_s27   ;;  %s32_s9 = sadd.s32 1, %s2313_s26 }
  0x1e   : > { %s29_s29 = ssub.s32 %s2317_s27, %s2448_s23  ;;  %p39_p13 = scmp.ne.s32.totalorder %s2313_s26, %s2309_s25 }
  0x1f   : > { %p30_p12 = scmp.eq.s32.totalorder %s29_s29, 0  ;;  %p40_p0 = scmp.eq.s32.totalorder %s2317_s27, 0 }
  0x20   : > { %p2461_p5 = por %p195_p2, %p39_p13  ;;  %p1994_p7 = scmp.lt.s32.totalorder %s2317_s27, 2 }
  0x21   : > { %s2457_s10 = scalar_select %p30_p12, %s2313_s26, %s32_s9  }
  0x22   : > { %p41_p3 = por %p40_p0, %p39_p13  ;;  %s281_s15 = sand.u32 1, %s2313_s26  }
  0x23   : > { %s1472_s16 = sshll.u32 %s281_s15, 3  ;;  %s1853_s11 = sshll.u32 %s2317_s27, 3 }
  0x24   : > { %s290_s19 = scalar_lea.hbm %s2690_s0, %s1853_s11  ;;  %s285_s18 = scalar_lea.vmem [#allocation2], %s1472_s16 }
  0x25   : > { %s293_s20 = sshll.u32 %s285_s18, 4  ;;  %s291_s29 = sshll.u32 %s290_s19, 4  ;;  %s294_s20 = int_to_ptr.vmem [resolvable:$true] %s293_s20  ;;  %s292_s29 = int_to_ptr.hbm [resolvable:$true] %s291_s29 }
  0x26   : > { %p2471_p9 = pnand %p1994_p7, %p41_p3  ;;  %s282_s21 = scalar_lea.sflag [#allocation3], %s281_s15 }
  0x27   : > { %s2213_s22 = sshra.s32 %s292_s29, 4  ;;  %s2220_s14 = scalar_lea.hbm %s2690_s0, 16  ;;  %s2214_s22 = int_to_ptr.hbm [resolvable:$true] %s2213_s22 }
  0x28   : > { %s2215_s1 = scalar_lea.hbm %s2214_s22, 8  ;;  %p2217_p10 = pneg %p2471_p9 }
  0x29   : > { %p2216_p2 = scmp.ne.s32.totalorder %s2214_s22, %s2215_s1  ;;  %p2221_p0 = scmp.lt.s32.totalorder %s2214_s22, %s2690_s0 }
  0x2a   : > { %p2222_p3 = scmp.lt.s32.totalorder %s2220_s14, %s2215_s1 }
  0x2b   : > { %p2218_p12 = pnand %p2217_p10, %p2216_p2 }
  0x2c   : > { %p2223_p7 = por %p2222_p3, %p2221_p0 }
  0x2d   : > { %p2219_p13 = pneg %p2218_p12 }
  0x2f   : > { %p2224_p11 = pnand %p2223_p7, %p2219_p13 }
  0x31   : > { %2227 = shalt.err (!%p2224_p11)
}
  0x32   : > { %s2708_s15 = smov 4   ;;  %s2709_s18 = smov 64  }
  0x33   : > { %1985 = dma.hbm_to_vmem [thread:$0]  (!%p2471_p9), %s292_s29, 128, %s294_s20, %s282_s21, %s2709_s18, %s2709_s18, %s2708_s15  }
  0x34   : > { %305 = sbr.rel (%p2414_p8) target bundleno = 853 (0x355), region = 48  ;;  %s2491_s11 = sand.u32 (!%p2414_p8), 1, %s2309_s25  }
  0x35   : > { %s1476_s1 = sshll.u32 (!%p2414_p8), %s2491_s11, 3  ;;  %s308_s22 = scalar_lea.sflag (!%p2414_p8), [#allocation3], %s2491_s11 }
  0x36   : > { %s2497_s16 = scalar_lea.vmem (!%p2414_p8), [#allocation2], %s1476_s1 }
  0x39   : > { %2288 = dma.done.wait (%p2401_p4), %s308_s22, 128  }
  0x3a   : > { %2290 = vsyncadd (%p2401_p4), %s308_s22, 4294967168 }
  0x3b   : > { %2292 = dma.done.wait (%p46_p1), [#allocation6], 3120  }
  0x3c   : > { %2294 = vsyncadd (%p46_p1), [#allocation6], 4294964176 }
  0x3d   : > { %2296 = dma.done.wait (%p46_p1), [#allocation9], 8192  }
  0x3e   : > { %2298 = vsyncadd (%p46_p1), [#allocation9], 4294959104  ;;  %v1572_v0 = vld [vmem:[#allocation5 + $0xa8] sm:$0xf]  ;;  %v1877_v1 = vld [vmem:[#allocation5 + $0xb0] sm:$0xf0] }
  0x3f   : > { %v1876_v2 = vld [vmem:[#allocation5 + $0xac] sm:$0xf]  ;;  %v1573_v3 = vor.u32 %v1877_v1, %v1572_v0  ;;  %v1574_v4 = vld [vmem:[#allocation5 + $0xb4] sm:$0xf0]  ;;  %v1580_v5 = vld [vmem:[#allocation5 + $0xb0] sm:$0xf] }
  0x40   : > { %v1878_v6 = vld [vmem:[#allocation5 + $0xb8] sm:$0xf0]  ;;  %v1577_v7 = vor.u32 %v1876_v2, %v1574_v4  ;;  %v1560_v9 = vld [vmem:[#allocation5 + $0x90] sm:$0xf]  ;;  %v1873_v11 = vld [vmem:[#allocation5 + $0x94] sm:$0xf] }
  0x41   : > { %v1581_v8 = vor.u32 %v1878_v6, %v1580_v5  ;;  %v1874_v10 = vld [vmem:[#allocation5 + $0x98] sm:$0xf0]  ;;  %541 = vmatpush.bf16.msra.mxu0 %v1573_v3  ;;  %v1562_v13 = vld [vmem:[#allocation5 + $0x9c] sm:$0xf0]  ;;  %v1568_v14 = vld [vmem:[#allocation5 + $0x98] sm:$0xf] }
  0x42   : > { %v1561_v12 = vor.u32 %v1874_v10, %v1560_v9  ;;  %v1875_v15 = vld [vmem:[#allocation5 + $0xa0] sm:$0xf0]  ;;  %555 = vmatpush.bf16.msra.mxu1 %v1577_v7  ;;  %v1565_v16 = vor.u32 %v1873_v11, %v1562_v13  ;;  %v1548_v18 = vld [vmem:[#allocation5 + $0x78] sm:$0xf]  ;;  %v1870_v20 = vld [vmem:[#allocation5 + $0x7c] sm:$0xf] }
  0x43   : > { %569 = vmatpush.bf16.msra.mxu2 %v1581_v8  ;;  %v1569_v17 = vor.u32 %v1875_v15, %v1568_v14  ;;  %v1871_v19 = vld [vmem:[#allocation5 + $0x80] sm:$0xf0]  ;;  %v1550_v21 = vld [vmem:[#allocation5 + $0x84] sm:$0xf0]  ;;  %v1556_v22 = vld [vmem:[#allocation5 + $0x80] sm:$0xf] }
  0x44   : > { %v1872_v23 = vld [vmem:[#allocation5 + $0x88] sm:$0xf0]  ;;  %v1549_v24 = vor.u32 %v1871_v19, %v1548_v18  ;;  %v1553_v25 = vor.u32 %v1870_v20, %v1550_v21  ;;  %v1536_v27 = vld [vmem:[#allocation5 + $0x60] sm:$0xf]  ;;  %v1867_v29 = vld [vmem:[#allocation5 + $0x64] sm:$0xf] }
  0x45   : > { %542 = vmatpush.bf16.msra.mxu0 %v1561_v12  ;;  %v1557_v26 = vor.u32 %v1872_v23, %v1556_v22  ;;  %v1868_v28 = vld [vmem:[#allocation5 + $0x68] sm:$0xf0]  ;;  %v1538_v30 = vld [vmem:[#allocation5 + $0x6c] sm:$0xf0]  ;;  %v1544_v31 = vld [vmem:[#allocation5 + $0x68] sm:$0xf] }
  0x46   : > { %556 = vmatpush.bf16.msra.mxu1 %v1565_v16  ;;  %v1869_v32 = vld [vmem:[#allocation5 + $0x70] sm:$0xf0]  ;;  %v1537_v33 = vor.u32 %v1868_v28, %v1536_v27  ;;  %v1541_v34 = vor.u32 %v1867_v29, %v1538_v30  ;;  %v1524_v36 = vld [vmem:[#allocation5 + $0x48] sm:$0xf]  ;;  %v1864_v38 = vld [vmem:[#allocation5 + $0x4c] sm:$0xf] }
  0x47   : > { %570 = vmatpush.bf16.msra.mxu2 %v1569_v17  ;;  %v1545_v35 = vor.u32 %v1869_v32, %v1544_v31  ;;  %v1865_v37 = vld [vmem:[#allocation5 + $0x50] sm:$0xf0]  ;;  %v1526_v39 = vld [vmem:[#allocation5 + $0x54] sm:$0xf0]  ;;  %v1532_v40 = vld [vmem:[#allocation5 + $0x50] sm:$0xf] }
  0x48   : > { %v1866_v41 = vld [vmem:[#allocation5 + $0x58] sm:$0xf0]  ;;  %v1525_v42 = vor.u32 %v1865_v37, %v1524_v36  ;;  %v1512_v43 = vld [vmem:[#allocation5 + $0x30] sm:$0xf]  ;;  %v1529_v45 = vor.u32 %v1864_v38, %v1526_v39  ;;  %v1861_v47 = vld [vmem:[#allocation5 + $0x34] sm:$0xf] }
  0x49   : > { %543 = vmatpush.bf16.msra.mxu0 %v1549_v24  ;;  %v1862_v44 = vld [vmem:[#allocation5 + $0x38] sm:$0xf0]  ;;  %v1533_v46 = vor.u32 %v1866_v41, %v1532_v40  ;;  %v1646_v48 = vld [vmem:[#allocation8 + $0x70] sm:$0xf]  ;;  %v1514_v50 = vld [vmem:[#allocation5 + $0x3c] sm:$0xf0] }
  0x4a   : > { %557 = vmatpush.bf16.msra.mxu1 %v1553_v25  ;;  %v1894_v49 = vld [vmem:[#allocation8 + $0x74] sm:$0xf0]  ;;  %v1520_v51 = vld [vmem:[#allocation5 + $0x38] sm:$0xf]  ;;  %v1863_v52 = vld [vmem:[#allocation5 + $0x40] sm:$0xf0]  ;;  %v1513_v54 = vor.u32 %v1862_v44, %v1512_v43  ;;  %v1517_v55 = vor.u32 %v1861_v47, %v1514_v50 }
  0x4b   : > { %571 = vmatpush.bf16.msra.mxu2 %v1557_v26  ;;  %v1647_v53 = vor.u32 %v1894_v49, %v1646_v48  ;;  %v1521_v56 = vor.u32 %v1863_v52, %v1520_v51  ;;  %v1500_v57 = vld [vmem:[#allocation5 + $0x18] sm:$0xf]  ;;  %v1859_v58 = vld [vmem:[#allocation5 + $0x20] sm:$0xf0]  ;;  %v1858_v59 = vld [vmem:[#allocation5 + $0x1c] sm:$0xf] }
  0x4c   : > { %v1502_v60 = vld [vmem:[#allocation5 + $0x24] sm:$0xf0]  ;;  %v1508_v61 = vld [vmem:[#allocation5 + $0x20] sm:$0xf]  ;;  %v1860_v62 = vld [vmem:[#allocation5 + $0x28] sm:$0xf0]  ;;  %v1501_v63 = vor.u32 %v1859_v58, %v1500_v57 }
  0x4d   : > { %544 = vmatpush.bf16.msra.mxu0 %v1537_v33  ;;  %994 = vmatpush.bf16.msra.mxu3 %v1647_v53  ;;  %v1505_v0 = vor.u32 %v1858_v59, %v1502_v60  ;;  %v1509_v1 = vor.u32 %v1860_v62, %v1508_v61  ;;  %v1488_v2 = vld [vmem:[#allocation5] sm:$0xf]  ;;  %v1856_v3 = vld [vmem:[#allocation5 + $0x8] sm:$0xf0]  ;;  %v1855_v4 = vld [vmem:[#allocation5 + $0x4] sm:$0xf] }
  0x4e   : > { %558 = vmatpush.bf16.msra.mxu1 %v1541_v34  ;;  %v1490_v5 = vld [vmem:[#allocation5 + $0xc] sm:$0xf0]  ;;  %v1496_v6 = vld [vmem:[#allocation5 + $0x8] sm:$0xf]  ;;  %v1857_v7 = vld [vmem:[#allocation5 + $0x10] sm:$0xf0]  ;;  %v1489_v10 = vor.u32 %v1856_v3, %v1488_v2 }
  0x4f   : > { %572 = vmatpush.bf16.msra.mxu2 %v1545_v35  ;;  %v1710_v8 = vld [vmem:[#allocation8 + $0xf0] sm:$0xf]  ;;  %v1910_v9 = vld [vmem:[#allocation8 + $0xf4] sm:$0xf0]  ;;  %v1493_v11 = vor.u32 %v1855_v4, %v1490_v5  ;;  %v1497_v12 = vor.u32 %v1857_v7, %v1496_v6  ;;  %v1638_v15 = vld [vmem:[#allocation8 + $0x60] sm:$0xf] }
  0x50   : > { %v1711_v13 = vor.u32 %v1910_v9, %v1710_v8  ;;  %v1854_v14 = vld [vmem:[%s2497_s16] sm:$0xff]  ;;  %v1892_v16 = vld [vmem:[#allocation8 + $0x64] sm:$0xf0]  ;;  %v1702_v17 = vld [vmem:[#allocation8 + $0xe0] sm:$0xf]  ;;  %s1943_s29 = sshll.u32 %s2392_s28, 3 }
  0x51   : > { %545 = vmatpush.bf16.msra.mxu0 %v1525_v42  ;;  %v1639_v18 = vor.u32 %v1892_v16, %v1638_v15  ;;  %v1908_v19 = vld [vmem:[#allocation8 + $0xe4] sm:$0xf0]  ;;  %v1630_v21 = vld [vmem:[#allocation8 + $0x50] sm:$0xf]  ;;  %v1890_v22 = vld [vmem:[#allocation8 + $0x54] sm:$0xf0]  ;;  %s1350_s17 = scalar_lea.hbm %s2697_s7, %s1943_s29 }
  0x52   : > { %559 = vmatpush.bf16.msra.mxu1 %v1529_v45  ;;  %v1703_v20 = vor.u32 %v1908_v19, %v1702_v17  ;;  %v1694_v23 = vld [vmem:[#allocation8 + $0xd0] sm:$0xf]  ;;  %v1631_v24 = vor.u32 %v1890_v22, %v1630_v21  ;;  %v1906_v25 = vld [vmem:[#allocation8 + $0xd4] sm:$0xf0]  ;;  %v1622_v27 = vld [vmem:[#allocation8 + $0x40] sm:$0xf] }
  0x53   : > { %573 = vmatpush.bf16.msra.mxu2 %v1533_v46  ;;  %995 = vmatpush.bf16.msra.mxu3 %v1639_v18  ;;  %v1695_v26 = vor.u32 %v1906_v25, %v1694_v23  ;;  %v1888_v28 = vld [vmem:[#allocation8 + $0x44] sm:$0xf0]  ;;  %v1686_v29 = vld [vmem:[#allocation8 + $0xc0] sm:$0xf]  ;;  %v1893_v32 = vld [vmem:[#allocation8 + $0x74] sm:$0xf] }
  0x54   : > { %v1623_v30 = vor.u32 %v1888_v28, %v1622_v27  ;;  %v1904_v31 = vld [vmem:[#allocation8 + $0xc4] sm:$0xf0]  ;;  %v1648_v33 = vld [vmem:[#allocation8 + $0x78] sm:$0xf0]  ;;  %v1614_v36 = vld [vmem:[#allocation8 + $0x30] sm:$0xf] }
  0x55   : > { %546 = vmatpush.bf16.msra.mxu0 %v1513_v54  ;;  %v1687_v34 = vor.u32 %v1904_v31, %v1686_v29  ;;  %v1651_v35 = vor.u32 %v1893_v32, %v1648_v33  ;;  %v1886_v37 = vld [vmem:[#allocation8 + $0x34] sm:$0xf0]  ;;  %v1678_v38 = vld [vmem:[#allocation8 + $0xb0] sm:$0xf]  ;;  %v1891_v41 = vld [vmem:[#allocation8 + $0x64] sm:$0xf] }
  0x56   : > { %560 = vmatpush.bf16.msra.mxu1 %v1517_v55  ;;  %v1615_v39 = vor.u32 %v1886_v37, %v1614_v36  ;;  %v1902_v40 = vld [vmem:[#allocation8 + $0xb4] sm:$0xf0]  ;;  %v1640_v42 = vld [vmem:[#allocation8 + $0x68] sm:$0xf0]  ;;  %v1774_v45 = vld [vmem:[#allocation8 + $0x170] sm:$0xf] }
  0x57   : > { %574 = vmatpush.bf16.msra.mxu2 %v1521_v56  ;;  %996 = vmatpush.bf16.msra.mxu3 %v1631_v24  ;;  %v1679_v43 = vor.u32 %v1902_v40, %v1678_v38  ;;  %v1643_v44 = vor.u32 %v1891_v41, %v1640_v42  ;;  %v1926_v46 = vld [vmem:[#allocation8 + $0x174] sm:$0xf0]  ;;  %v1606_v48 = vld [vmem:[#allocation8 + $0x20] sm:$0xf]  ;;  %v1884_v49 = vld [vmem:[#allocation8 + $0x24] sm:$0xf0] }
  0x58   : > { %v1775_v47 = vor.u32 %v1926_v46, %v1774_v45  ;;  %v1670_v50 = vld [vmem:[#allocation8 + $0xa0] sm:$0xf]  ;;  %v1607_v51 = vor.u32 %v1884_v49, %v1606_v48  ;;  %v1900_v52 = vld [vmem:[#allocation8 + $0xa4] sm:$0xf0]  ;;  %v1889_v53 = vld [vmem:[#allocation8 + $0x54] sm:$0xf] }
  0x59   : > { %547 = vmatpush.bf16.msra.mxu0 %v1501_v63  ;;  %v1632_v54 = vld [vmem:[#allocation8 + $0x58] sm:$0xf0]  ;;  %v1671_v55 = vor.u32 %v1900_v52, %v1670_v50  ;;  %v1766_v57 = vld [vmem:[#allocation8 + $0x160] sm:$0xf]  ;;  %v1924_v58 = vld [vmem:[#allocation8 + $0x164] sm:$0xf0] }
  0x5a   : > { %561 = vmatpush.bf16.msra.mxu1 %v1505_v0  ;;  %v1635_v56 = vor.u32 %v1889_v53, %v1632_v54  ;;  %v1767_v59 = vor.u32 %v1924_v58, %v1766_v57  ;;  %v1598_v60 = vld [vmem:[#allocation8 + $0x10] sm:$0xf]  ;;  %v1882_v61 = vld [vmem:[#allocation8 + $0x14] sm:$0xf0]  ;;  %v1624_v2 = vld [vmem:[#allocation8 + $0x48] sm:$0xf0] }
  0x5b   : > { %575 = vmatpush.bf16.msra.mxu2 %v1509_v1  ;;  %997 = vmatpush.bf16.msra.mxu3 %v1623_v30  ;;  %v1662_v62 = vld [vmem:[#allocation8 + $0x90] sm:$0xf]  ;;  %v1599_v63 = vor.u32 %v1882_v61, %v1598_v60  ;;  %v1898_v0 = vld [vmem:[#allocation8 + $0x94] sm:$0xf0]  ;;  %v1887_v1 = vld [vmem:[#allocation8 + $0x44] sm:$0xf] }
  0x5c   : > { %v1663_v3 = vor.u32 %v1898_v0, %v1662_v62  ;;  %v1627_v4 = vor.u32 %v1887_v1, %v1624_v2  ;;  %v2512_v5 = vld [vmem:[#allocation7] sm:$0x7]  ;;  %v1758_v6 = vld [vmem:[#allocation8 + $0x150] sm:$0xf]  ;;  %v1922_v7 = vld [vmem:[#allocation8 + $0x154] sm:$0xf0] }
  0x5d   : > { %548 = vmatpush.bf16.msra.mxu0 %v1489_v10  ;;  %v1759_v8 = vor.u32 %v1922_v7, %v1758_v6  ;;  %v1590_v9 = vld [vmem:[#allocation8] sm:$0xf]  ;;  %v1880_v10 = vld [vmem:[#allocation8 + $0x4] sm:$0xf0]  ;;  %v1616_v15 = vld [vmem:[#allocation8 + $0x38] sm:$0xf0] }
  0x5e   : > { %562 = vmatpush.bf16.msra.mxu1 %v1493_v11  ;;  %v1654_v11 = vld [vmem:[#allocation8 + $0x80] sm:$0xf]  ;;  %v1909_v18 = vld [vmem:[#allocation8 + $0xf4] sm:$0xf]  ;;  %v1712_v19 = vld [vmem:[#allocation8 + $0xf8] sm:$0xf0] }
  0x5f   : > { %576 = vmatpush.bf16.msra.mxu2 %v1497_v12  ;;  %998 = vmatpush.bf16.msra.mxu3 %v1615_v39  ;;  %v1591_v12 = vor.u32 %v1880_v10, %v1590_v9  ;;  %v1715_v21 = vor.u32 %v1909_v18, %v1712_v19  ;;  %v1776_v22 = vld [vmem:[#allocation8 + $0x178] sm:$0xf0]  ;;  %v1750_v23 = vld [vmem:[#allocation8 + $0x140] sm:$0xf]  ;;  %v1920_v24 = vld [vmem:[#allocation8 + $0x144] sm:$0xf0] }
  0x60   : > { %549 = vmatmul.bf16.vlgmr.msra.gmra.mxu0 %v1854_v14  ;;  %v401_v25 = vperm.slane %v2512_v5, 0  ;;  %v1751_v28 = vor.u32 %v1920_v24, %v1750_v23  ;;  %v1883_v29 = vld [vmem:[#allocation8 + $0x24] sm:$0xf]  ;;  %v1608_v30 = vld [vmem:[#allocation8 + $0x28] sm:$0xf0]  ;;  %s362_s19 = scalar_lea.vmem [#allocation11], %s1476_s1 }
  0x61   : > { %1008 = vmatpush.bf16.msrb.mxu0 %v1711_v13  ;;  %563 = vmatmul.bf16.vlgmr.msra.gmra.mxu1 %v1854_v14  ;;  %v1896_v13 = vld [vmem:[#allocation8 + $0x84] sm:$0xf0]  ;;  %v1907_v31 = vld [vmem:[#allocation8 + $0xe4] sm:$0xf]  ;;  %v1611_v32 = vor.u32 %v1883_v29, %v1608_v30  ;;  %v1704_v33 = vld [vmem:[#allocation8 + $0xe8] sm:$0xf0] }
  0x62   : > { %577 = vmatmul.bf16.vlgmr.msra.gmra.mxu2 %v1854_v14  ;;  %1022 = vmatpush.bf16.msrb.mxu1 %v1775_v47  ;;  %v1885_v14 = vld [vmem:[#allocation8 + $0x34] sm:$0xf]  ;;  %v1655_v16 = vor.u32 %v1896_v13, %v1654_v11  ;;  %v1707_v37 = vor.u32 %v1907_v31, %v1704_v33  ;;  %v1742_v39 = vld [vmem:[#allocation8 + $0x130] sm:$0xf]  ;;  %v1918_v40 = vld [vmem:[#allocation8 + $0x134] sm:$0xf0] }
  0x63   : > { %1036 = vmatpush.bf16.msrb.mxu2 %v1651_v35  ;;  %999 = vmatpush.bf16.msra.mxu3 %v1607_v51  ;;  %v1619_v17 = vor.u32 %v1885_v14, %v1616_v15  ;;  %v1768_v35 = vld [vmem:[#allocation8 + $0x168] sm:$0xf0]  ;;  %v1881_v46 = vld [vmem:[#allocation8 + $0x14] sm:$0xf]  ;;  %v1600_v47 = vld [vmem:[#allocation8 + $0x18] sm:$0xf0] }
  0x64   : > { %v1905_v48 = vld [vmem:[#allocation8 + $0xd4] sm:$0xf]  ;;  %v1603_v50 = vor.u32 %v1881_v46, %v1600_v47  ;;  %v1696_v51 = vld [vmem:[#allocation8 + $0xd8] sm:$0xf0]  ;;  %v1916_v58 = vld [vmem:[#allocation8 + $0x124] sm:$0xf0] }
  0x65   : > { %1009 = vmatpush.bf16.msrb.mxu0 %v1703_v20  ;;  %v1925_v20 = vld [vmem:[#allocation8 + $0x174] sm:$0xf]  ;;  %v1699_v54 = vor.u32 %v1905_v48, %v1696_v51  ;;  %v1592_v60 = vld [vmem:[#allocation8 + $0x8] sm:$0xf0]  ;;  %v1919_v1 = vld [vmem:[#allocation8 + $0x144] sm:$0xf] }
  0x66   : > { %1023 = vmatpush.bf16.msrb.mxu1 %v1767_v59  ;;  %v1779_v27 = vor.u32 %v1925_v20, %v1776_v22  ;;  %v1921_v52 = vld [vmem:[#allocation8 + $0x154] sm:$0xf]  ;;  %v1879_v59 = vld [vmem:[#allocation8 + $0x4] sm:$0xf]  ;;  %v1688_v0 = vld [vmem:[#allocation8 + $0xc8] sm:$0xf0] }
  0x67   : > { %1037 = vmatpush.bf16.msrb.mxu2 %v1643_v44  ;;  %1000 = vmatpush.bf16.msra.mxu3 %v1599_v63  ;;  %v1743_v44 = vor.u32 %v1918_v40, %v1742_v39  ;;  %v1595_v62 = vor.u32 %v1879_v59, %v1592_v60  ;;  %v1903_v63 = vld [vmem:[#allocation8 + $0xc4] sm:$0xf]  ;;  %v1726_v6 = vld [vmem:[#allocation8 + $0x110] sm:$0xf]  ;;  %v1914_v7 = vld [vmem:[#allocation8 + $0x114] sm:$0xf0] }
  0x68   : > { %v1727_v11 = vor.u32 %v1914_v7, %v1726_v6  ;;  %v1901_v18 = vld [vmem:[#allocation8 + $0xb4] sm:$0xf]  ;;  %v1680_v19 = vld [vmem:[#allocation8 + $0xb8] sm:$0xf0]  ;;  %v1899_v30 = vld [vmem:[#allocation8 + $0xa4] sm:$0xf] }
  0x69   : > { %1010 = vmatpush.bf16.msrb.mxu0 %v1695_v26  ;;  %v402_v26 = vperm.slane %v2512_v5, 1  ;;  %v1683_v23 = vor.u32 %v1901_v18, %v1680_v19  ;;  %v1915_v33 = vld [vmem:[#allocation8 + $0x124] sm:$0xf]  ;;  %v1913_v47 = vld [vmem:[#allocation8 + $0x114] sm:$0xf]  ;;  %s1351_s15 = sshll.u32 %s362_s19, 4  ;;  %s1352_s15 = int_to_ptr.vmem [resolvable:$true] %s1351_s15 }
  0x6a   : > { %1024 = vmatpush.bf16.msrb.mxu1 %v1759_v8  ;;  %v1728_v48 = vld [vmem:[#allocation8 + $0x118] sm:$0xf0]  ;;  %v1656_v59 = vld [vmem:[#allocation8 + $0x88] sm:$0xf0]  ;;  %s1353_s18 = sshll.u32 %s1350_s17, 4  ;;  %s1339_s22 = scalar_lea.sflag [#allocation4], %s2491_s11  ;;  %s1354_s18 = int_to_ptr.hbm [resolvable:$true] %s1353_s18 }
  0x6b   : > { %1038 = vmatpush.bf16.msrb.mxu2 %v1635_v56  ;;  %1001 = vmatpush.bf16.msra.mxu3 %v1591_v12  ;;  %v1734_v56 = vld [vmem:[#allocation8 + $0x120] sm:$0xf]  ;;  %s2257_s28 = sshra.s32 %s1354_s18, 4  ;;  %s2263_s1 = scalar_lea.hbm %s2697_s7, 16  ;;  %s2258_s28 = int_to_ptr.hbm [resolvable:$true] %s2257_s28 }
  0x6c   : > { %v1735_v61 = vor.u32 %v1916_v58, %v1734_v56  ;;  %v1731_v56 = vor.u32 %v1913_v47, %v1728_v48  ;;  %v1895_v58 = vld [vmem:[#allocation8 + $0x84] sm:$0xf]  ;;  %s2259_s16 = scalar_lea.hbm %s2258_s28, 8  ;;  %p2264_p11 = scmp.lt.s32.totalorder %s2258_s28, %s2697_s7 }
  0x6d   : > { %1011 = vmatpush.bf16.msrb.mxu0 %v1687_v34  ;;  %v1923_v34 = vld [vmem:[#allocation8 + $0x164] sm:$0xf]  ;;  %p2260_p1 = scmp.ne.s32.totalorder %s2258_s28, %s2259_s16  ;;  %p2265_p9 = scmp.lt.s32.totalorder %s2263_s1, %s2259_s16 }
  0x6e   : > { %1025 = vmatpush.bf16.msrb.mxu1 %v1751_v28  ;;  %v1771_v38 = vor.u32 %v1923_v34, %v1768_v35  ;;  %v1912_v28 = vld [vmem:[#allocation8 + $0x104] sm:$0xf0] }
  0x6f   : > { %1039 = vmatpush.bf16.msrb.mxu2 %v1627_v4  ;;  %1050 = vmatpush.bf16.msrb.mxu3 %v1715_v21  ;;  %v1752_v4 = vld [vmem:[#allocation8 + $0x148] sm:$0xf0]  ;;  %p2261_p4 = pnand %p2260_p1, %p2461_p5  ;;  %p2266_p2 = por %p2265_p9, %p2264_p11 }
  0x70   : > { %v1755_v10 = vor.u32 %v1919_v1, %v1752_v4 }
  0x71   : > { %1012 = vmatpush.bf16.msrb.mxu0 %v1679_v43  ;;  %v403_v43 = vperm.slane %v2512_v5, 2  ;;  %p2262_p8 = pneg %p2261_p4 }
  0x72   : > { %1026 = vmatpush.bf16.msrb.mxu1 %v1743_v44 }
  0x73   : > { %1040 = vmatpush.bf16.msrb.mxu2 %v1619_v17  ;;  %1051 = vmatpush.bf16.msrb.mxu3 %v1707_v37  ;;  %v1897_v37 = vld [vmem:[#allocation8 + $0x94] sm:$0xf]  ;;  %p2267_p10 = pnand %p2266_p2, %p2262_p8 }
  0x75   : > { %1013 = vmatpush.bf16.msrb.mxu0 %v1671_v55  ;;  %v1760_v55 = vld [vmem:[#allocation8 + $0x158] sm:$0xf0] }
  0x76   : > { %v1763_v57 = vor.u32 %v1921_v52, %v1760_v55  ;;  %1027 = vmatpush.bf16.msrb.mxu1 %v1735_v61 }
  0x77   : > { %1041 = vmatpush.bf16.msrb.mxu2 %v1611_v32  ;;  %1052 = vmatpush.bf16.msrb.mxu3 %v1699_v54  ;;  %v1672_v32 = vld [vmem:[#allocation8 + $0xa8] sm:$0xf0] }
  0x78   : > { %v1675_v40 = vor.u32 %v1899_v30, %v1672_v32 }
  0x79   : > { %1014 = vmatpush.bf16.msrb.mxu0 %v1663_v3  ;;  %v1691_v3 = vor.u32 %v1903_v63, %v1688_v0 }
  0x7a   : > { %1028 = vmatpush.bf16.msrb.mxu1 %v1727_v11 }
  0x7b   : > { %1042 = vmatpush.bf16.msrb.mxu2 %v1603_v50  ;;  %1053 = vmatpush.bf16.msrb.mxu3 %v1691_v3  ;;  %v1659_v3 = vor.u32 %v1895_v58, %v1656_v59 }
  0x7d   : > { %1015 = vmatpush.bf16.msrb.mxu0 %v1655_v16 }
  0x7f   : > { %1043 = vmatpush.bf16.msrb.mxu2 %v1595_v62  ;;  %1054 = vmatpush.bf16.msrb.mxu3 %v1683_v23  ;;  %v1928_v23 = vld [vmem:[#allocation10 + $0x8] sm:$0xff] }
  0x81   : > { %1064 = vmatpush.bf16.msra.mxu0 %v1779_v27  ;;  %v1718_v27 = vld [vmem:[#allocation8 + $0x100] sm:$0xf] }
  0x82   : > { %v1719_v35 = vor.u32 %v1912_v28, %v1718_v27  ;;  %v1939_v27 = vld [vmem:[#allocation10 + $0x60] sm:$0xff] }
  0x83   : > { %1055 = vmatpush.bf16.msrb.mxu3 %v1675_v40 }
  0x84   : > { %1029 = vmatpush.bf16.msrb.mxu1 %v1719_v35 }
  0x85   : > { %1065 = vmatpush.bf16.msra.mxu0 %v1771_v38 }
  0x89   : > { %1066 = vmatpush.bf16.msra.mxu0 %v1763_v57 }
  0x8d   : > { %1067 = vmatpush.bf16.msra.mxu0 %v1755_v10 }
  0xdd   : > { %v550_v36 = vpop.f32.mrf.mxu0 }
  0xde   : > { %v551_v41 = vadd.f32 %v550_v36, %v401_v25  ;;  %v564_v42 = vpop.f32.mrf.mxu1  ;;  %v1736_v36 = vld [vmem:[#allocation8 + $0x128] sm:$0xf0] }
  0xdf   : > { %v565_v45 = vadd.f32 %v564_v42, %v402_v26 }
  0xe0   : > { %v1582_v49 = vmul.f32 -1.442695, %v551_v41  ;;  %v1664_v41 = vld [vmem:[#allocation8 + $0x98] sm:$0xf0] }
  0xe1   : > { %v1583_v53 = vmul.f32 -1.442695, %v565_v45  ;;  %v1739_v45 = vor.u32 %v1915_v33, %v1736_v36 }
  0xe2   : > { %2045 = vpow2.f32 %v1582_v49 }
  0xe3   : > { %2047 = vpow2.f32 %v1583_v53 }
  0xe5   : > { %v578_v2 = vpop.f32.mrf.mxu2  ;;  %v552_v9 = vpop.f32.mrf.mxu0 }
  0xe6   : > { %v579_v8 = vadd.f32 %v578_v2, %v403_v43  ;;  %v553_v12 = vadd.f32 %v552_v9, %v401_v25  ;;  %v566_v13 = vpop.f32.mrf.mxu1  ;;  %v1917_v25 = vld [vmem:[#allocation8 + $0x134] sm:$0xf] }
  0xe7   : > { %v567_v15 = vadd.f32 %v566_v13, %v402_v26  ;;  %v1744_v26 = vld [vmem:[#allocation8 + $0x138] sm:$0xf0] }
  0xe8   : > { %v1584_v14 = vmul.f32 -1.442695, %v579_v8  ;;  %v2046_v16 = vpop.eup %2045  ;;  %v1585_v17 = vmul.f32 -1.442695, %v553_v12  ;;  %v1747_v34 = vor.u32 %v1917_v25, %v1744_v26 }
  0xe9   : > { %v2048_v20 = vpop.eup %2047  ;;  %v2527_v21 = vadd.f32 1.0, %v2046_v16  ;;  %v1586_v22 = vmul.f32 -1.442695, %v567_v15  ;;  %v1911_v15 = vld [vmem:[#allocation8 + $0x104] sm:$0xf] }
  0xea   : > { %2049 = vpow2.f32 %v1584_v14  ;;  %v2529_v24 = vadd.f32 1.0, %v2048_v20  ;;  %1068 = vmatpush.bf16.msra.mxu0 %v1747_v34  ;;  %v1720_v16 = vld [vmem:[#allocation8 + $0x108] sm:$0xf0] }
  0xeb   : > { %2051 = vpow2.f32 %v1585_v17  ;;  %v616_v55 = vand.u32 2147483647, %v2527_v21  ;;  %v618_v57 = vand.u32 2147483648, %v2527_v21  ;;  %vm612_vm0 = vweird.f32 %v2527_v21 }
  0xec   : > { %2053 = vrcp.f32 %v2527_v21  ;;  %v633_v61 = vand.u32 2147483648, %v2529_v24  ;;  %vm627_vm1 = vweird.f32 %v2529_v24  ;;  %v631_v2 = vand.u32 2147483647, %v2529_v24 }
  0xed   : > { %2055 = vrcp.f32 %v2529_v24  ;;  %v580_v29 = vpop.f32.mrf.mxu2  ;;  %vm2565_vm2 = vcmp.eq.f32.partialorder %v616_v55, 8.507059e+37  ;;  %v619_v8 = vor.u32 1.1754944e-38, %v618_v57  ;;  %v1723_v30 = vor.u32 %v1911_v15, %v1720_v16  ;;  %v1929_v16 = vld [vmem:[#allocation10 + $0x10] sm:$0xff] }
  0xee   : > { %2057 = vpow2.f32 %v1586_v22  ;;  %v581_v31 = vadd.f32 %v580_v29, %v403_v43  ;;  %v1667_v43 = vor.u32 %v1897_v37, %v1664_v41  ;;  %1069 = vmatpush.bf16.msra.mxu0 %v1739_v45  ;;  %v634_v12 = vor.u32 1.1754944e-38, %v633_v61 }
  0xef   : > { %vm2584_vm8 = vcmp.eq.f32.partialorder %v631_v2, 8.507059e+37 }
  0xf0   : > { %v2050_v38 = vpop.eup %2049  ;;  %v1587_v39 = vmul.f32 -1.442695, %v581_v31  ;;  %1056 = vmatpush.bf16.msrb.mxu3 %v1667_v43 }
  0xf1   : > { %v2052_v42 = vpop.eup %2051  ;;  %v2535_v44 = vadd.f32 1.0, %v2050_v38 }
  0xf2   : > { %v2537_v46 = vpop.eup %2053  ;;  %v2539_v5 = vadd.f32 1.0, %v2052_v42  ;;  %2059 = vpow2.f32 %v1587_v39  ;;  %1070 = vmatpush.bf16.msra.mxu0 %v1731_v56 }
  0xf3   : > { %v2541_v49 = vpop.eup %2055  ;;  %2061 = vrcp.f32 %v2535_v44  ;;  %v608_v50 = vmul.f32 %v2537_v46, %v2527_v21  ;;  %vm613_vm3 = vweird.f32 %v2537_v46  ;;  %vm642_vm4 = vweird.f32 %v2535_v44 }
  0xf4   : > { %v2058_v51 = vpop.eup %2057  ;;  %v623_v52 = vmul.f32 %v2541_v49, %v2529_v24  ;;  %2063 = vrcp.f32 %v2539_v5  ;;  %v661_v9 = vand.u32 2147483647, %v2539_v5  ;;  %1057 = vmatpush.bf16.msrb.mxu3 %v1659_v3  ;;  %vm657_vm5 = vweird.f32 %v2539_v5  ;;  %vm2594_vm9 = vmor %vm612_vm0, %vm613_vm3  ;;  %v1934_v3 = vld [vmem:[#allocation10 + $0x38] sm:$0xff] }
  0xf5   : > { %v2549_v53 = vadd.f32 1.0, %v2058_v51  ;;  %v609_v54 = vsub.f32 1.0, %v608_v50  ;;  %v663_v19 = vand.u32 2147483648, %v2539_v5  ;;  %vm628_vm6 = vweird.f32 %v2541_v49  ;;  %1288 = vmatpush.bf16.msra.mxu1 %v1934_v3 }
  0xf6   : > { %v624_v60 = vsub.f32 1.0, %v623_v52  ;;  %vm2580_vm7 = vcmp.eq.f32.partialorder %v661_v9, 8.507059e+37  ;;  %v646_v26 = vand.u32 2147483647, %v2535_v44  ;;  %v648_v34 = vand.u32 2147483648, %v2535_v44  ;;  %vm2608_vm11 = vmor %vm627_vm1, %vm628_vm6  ;;  %1071 = vmatpush.bf16.msra.mxu0 %v1723_v30  ;;  %v1942_v9 = vld [vmem:[#allocation10 + $0x78] sm:$0xff] }
  0xf7   : > { %2065 = vrcp.f32 %v2549_v53  ;;  %v610_v63 = vmul.f32 %v2537_v46, %v609_v54  ;;  %v676_v25 = vand.u32 2147483647, %v2549_v53  ;;  %v664_v36 = vor.u32 1.1754944e-38, %v663_v19  ;;  %1302 = vmatpush.bf16.msra.mxu2 %v1942_v9  ;;  %v1940_v19 = vld [vmem:[#allocation10 + $0x68] sm:$0xff] }
  0xf8   : > { %v2060_v62 = vpop.eup %2059  ;;  %v625_v11 = vmul.f32 %v2541_v49, %v624_v60  ;;  %v678_v38 = vand.u32 2147483648, %v2549_v53  ;;  %vm672_vm14 = vweird.f32 %v2549_v53  ;;  %v649_v56 = vor.u32 1.1754944e-38, %v648_v34 }
  0xf9   : > { %v2557_v0 = vpop.eup %2061  ;;  %v2559_v1 = vadd.f32 1.0, %v2060_v62  ;;  %v611_v13 = vadd.f32 %v2537_v46, %v610_v63  ;;  %vm2624_vm0 = vcmp.eq.f32.partialorder %v676_v25, 8.507059e+37 }
  0xfa   : > { %v2064_v4 = vpop.eup %2063  ;;  %v638_v6 = vmul.f32 %v2557_v0, %v2535_v44  ;;  %v626_v29 = vadd.f32 %v2541_v49, %v625_v11  ;;  %vm643_vm12 = vweird.f32 %v2557_v0  ;;  %v1930_v11 = vld [vmem:[#allocation10 + $0x18] sm:$0xff] }
  0xfb   : > { %2067 = vrcp.f32 %v2559_v1  ;;  %v653_v10 = vmul.f32 %v2064_v4, %v2539_v5  ;;  %vm658_vm10 = vweird.f32 %v2064_v4  ;;  %v615_v31 = vsel %vm2594_vm9, %v2537_v46, %v611_v13  ;;  %vm2633_vm1 = vmor %vm642_vm4, %vm643_vm12 }
  0xfc   : > { %v639_v14 = vsub.f32 1.0, %v638_v6  ;;  %vm659_vm13 = vmor %vm657_vm5, %vm658_vm10  ;;  %v620_v24 = vsel %vm2565_vm2, %v619_v8, %v615_v31  ;;  %v630_v42 = vsel %vm2608_vm11, %v2541_v49, %v626_v29  ;;  %v679_v49 = vor.u32 1.1754944e-38, %v678_v38  ;;  %v1931_v6 = vld [vmem:[#allocation10 + $0x20] sm:$0xff] }
  0xfd   : > { %v2066_v17 = vpop.eup %2065  ;;  %v654_v18 = vsub.f32 1.0, %v653_v10  ;;  %vm687_vm3 = vweird.f32 %v2559_v1  ;;  %v693_v51 = vand.u32 2147483648, %v2559_v1  ;;  %v691_v54 = vand.u32 2147483647, %v2559_v1  ;;  %v1927_v31 = vld [vmem:[#allocation10] sm:$0xff] }
  0xfe   : > { %v668_v20 = vmul.f32 %v2066_v17, %v2549_v53  ;;  %v640_v33 = vmul.f32 %v2557_v0, %v639_v14  ;;  %vm673_vm15 = vweird.f32 %v2066_v17  ;;  %v635_v44 = vsel %vm2584_vm8, %v634_v12, %v630_v42  ;;  %v1941_v14 = vld [vmem:[#allocation10 + $0x70] sm:$0xff]  ;;  %v1936_v42 = vld [vmem:[#allocation10 + $0x48] sm:$0xff] }
  0xff   : > { %v655_v28 = vmul.f32 %v2064_v4, %v654_v18  ;;  %vm674_vm2 = vmor %vm672_vm14, %vm673_vm15  ;;  %vm647_vm4 = vcmp.eq.f32.partialorder %v646_v26, 8.507059e+37  ;;  %v694_v60 = vor.u32 1.1754944e-38, %v693_v51  ;;  %1303 = vmatpush.bf16.msra.mxu2 %v1941_v14 }
 0x100   : > { %v669_v32 = vsub.f32 1.0, %v668_v20  ;;  %v641_v43 = vadd.f32 %v2557_v0, %v640_v33  ;;  %v1938_v33 = vld [vmem:[#allocation10 + $0x58] sm:$0xff] }
 0x101   : > { %v2068_v35 = vpop.eup %2067  ;;  %v656_v21 = vadd.f32 %v2064_v4, %v655_v28 }
 0x102   : > { %v683_v39 = vmul.f32 %v2068_v35, %v2559_v1  ;;  %v670_v40 = vmul.f32 %v2066_v17, %v669_v32  ;;  %vm688_vm5 = vweird.f32 %v2068_v35  ;;  %v645_v58 = vsel %vm2633_vm1, %v2557_v0, %v641_v43  ;;  %v1932_v0 = vld [vmem:[#allocation10 + $0x28] sm:$0xff] }
 0x103   : > { %v660_v41 = vsel %vm659_vm13, %v2064_v4, %v656_v21  ;;  %vm689_vm6 = vmor %vm687_vm3, %vm688_vm5  ;;  %v650_v62 = vsel %vm647_vm4, %v649_v56, %v645_v58  ;;  %v1933_v4 = vld [vmem:[#allocation10 + $0x30] sm:$0xff]  ;;  %v748_v1 = vld [vmem:[%s2694_s4] sm:$0x3]  ;;  %1304 = vmatpush.bf16.msra.mxu2 %v1940_v19 }
 0x104   : > { %v665_v46 = vsel %vm2580_vm7, %v664_v36, %v660_v41  ;;  %v671_v5 = vadd.f32 %v2066_v17, %v670_v40  ;;  %v684_v48 = vsub.f32 1.0, %v683_v39  ;;  %vm692_vm7 = vcmp.eq.f32.partialorder %v691_v54, 8.507059e+37  ;;  %1289 = vmatpush.bf16.msra.mxu1 %v1933_v4  ;;  %v1937_v40 = vld [vmem:[#allocation10 + $0x50] sm:$0xff] }
 0x105   : > { %v697_v50 = vpack.c.bf16 %v665_v46, %v620_v24  ;;  %v750_v8 = vperm.slane %v748_v1, 0  ;;  %v751_v28 = vperm.slane %v748_v1, 1 }
 0x106   : > { %v675_v52 = vsel %vm674_vm2, %v2066_v17, %v671_v5  ;;  %v685_v53 = vmul.f32 %v2068_v35, %v684_v48 }
 0x107   : > { %1002 = vmatmul.bf16.vlgmr.msra.gmra.mxu3 %v697_v50  ;;  %v680_v55 = vsel %vm2624_vm0, %v679_v49, %v675_v52  ;;  %1044 = vmatmul.bf16.vlgmr.msrb.gmra.mxu2 %v697_v50  ;;  %v1935_v50 = vld [vmem:[#allocation10 + $0x40] sm:$0xff] }
 0x108   : > { %v698_v57 = vpack.c.bf16 %v680_v55, %v635_v44  ;;  %v686_v59 = vadd.f32 %v2068_v35, %v685_v53  ;;  %1290 = vmatpush.bf16.msra.mxu1 %v1932_v0  ;;  %1305 = vmatpush.bf16.msra.mxu2 %v1939_v27 }
 0x10a   : > { %1016 = vmatmul.bf16.vlgmr.msrb.gmra.mxu0 %v698_v57  ;;  %v690_v61 = vsel %vm689_vm6, %v2068_v35, %v686_v59 }
 0x10b   : > { %v695_v63 = vsel %vm692_vm7, %v694_v60, %v690_v61 }
 0x10c   : > { %v699_v2 = vpack.c.bf16 %v695_v63, %v650_v62  ;;  %1291 = vmatpush.bf16.msra.mxu1 %v1931_v6  ;;  %1306 = vmatpush.bf16.msra.mxu2 %v1938_v33 }
 0x10e   : > { %1030 = vmatmul.bf16.vlgmr.msrb.gmra.mxu1 %v699_v2 }
 0x110   : > { %1292 = vmatpush.bf16.msra.mxu1 %v1930_v11  ;;  %1307 = vmatpush.bf16.msra.mxu2 %v1937_v40 }
 0x114   : > { %1293 = vmatpush.bf16.msra.mxu1 %v1929_v16  ;;  %1308 = vmatpush.bf16.msra.mxu2 %v1936_v42 }
 0x117   : > { %1058 = vmatmul.bf16.vlgmr.msrb.gmra.mxu3 %v698_v57 }
 0x118   : > { %1294 = vmatpush.bf16.msra.mxu1 %v1928_v23  ;;  %1309 = vmatpush.bf16.msra.mxu2 %v1935_v50 }
 0x11a   : > { %1072 = vmatmul.bf16.vlgmr.msra.gmra.mxu0 %v699_v2 }
 0x11c   : > { %1295 = vmatpush.bf16.msra.mxu1 %v1927_v31 }
 0x187   : > { %v1017_v7 = vpop.f32.mrf.mxu0 }
 0x18a   : > { %v1003_v10 = vpop.f32.mrf.mxu3  ;;  %v1045_v26 = vpop.f32.mrf.mxu2 }
 0x18b   : > { %v1004_v12 = vadd.f32 %v1003_v10, %v750_v8  ;;  %v1031_v13 = vpop.f32.mrf.mxu1  ;;  %v1046_v35 = vadd.f32 %v1045_v26, %v751_v28 }
 0x18d   : > { %v1018_v15 = vadd.f32 %v1017_v7, %v1004_v12 }
 0x18f   : > { %v1032_v17 = vadd.f32 %v1031_v13, %v1018_v15  ;;  %v1019_v18 = vpop.f32.mrf.mxu0 }
 0x191   : > { %v1780_v20 = vmul.f32 -1.442695, %v1032_v17 }
 0x192   : > { %v1005_v22 = vpop.f32.mrf.mxu3  ;;  %v1047_v41 = vpop.f32.mrf.mxu2 }
 0x193   : > { %2069 = vpow2.f32 %v1780_v20  ;;  %v1006_v25 = vadd.f32 %v1005_v22, %v750_v8  ;;  %v1033_v30 = vpop.f32.mrf.mxu1  ;;  %v1048_v5 = vadd.f32 %v1047_v41, %v751_v28 }
 0x195   : > { %v1020_v29 = vadd.f32 %v1019_v18, %v1006_v25 }
 0x197   : > { %v1034_v32 = vadd.f32 %v1033_v30, %v1020_v29  ;;  %v1073_v37 = vpop.f32.mrf.mxu0 }
 0x199   : > { %v2070_v34 = vpop.eup %2069  ;;  %v1782_v21 = vmul.f32 -1.442695, %v1034_v32 }
 0x19a   : > { %v1090_v36 = vadd.f32 1.0, %v2070_v34  ;;  %v1059_v38 = vpop.f32.mrf.mxu3 }
 0x19b   : > { %2071 = vpow2.f32 %v1782_v21  ;;  %v1060_v39 = vadd.f32 %v1059_v38, %v1046_v35 }
 0x19c   : > { %2073 = vrcp.f32 %v1090_v36  ;;  %vm1099_vm9 = vweird.f32 %v1090_v36  ;;  %v1105_v62 = vand.u32 2147483648, %v1090_v36  ;;  %v1103_v3 = vand.u32 2147483647, %v1090_v36 }
 0x19d   : > { %v1074_v24 = vadd.f32 %v1073_v37, %v1060_v39  ;;  %v2044_v37 = vld [vmem:[%s2696_s6] ss:$0 sm:$0xff] }
 0x19e   : > { %v1106_v10 = vor.u32 1.1754944e-38, %v1105_v62  ;;  %vm1104_vm14 = vcmp.eq.f32.partialorder %v1103_v3, 8.507059e+37 }
 0x19f   : > { %v1781_v45 = vmul.f32 -1.442695, %v1074_v24  ;;  %v1075_v52 = vpop.f32.mrf.mxu0 }
 0x1a1   : > { %v2072_v46 = vpop.eup %2071  ;;  %2075 = vpow2.f32 %v1781_v45 }
 0x1a2   : > { %v2074_v43 = vpop.eup %2073  ;;  %v1092_v47 = vadd.f32 1.0, %v2072_v46  ;;  %v1061_v48 = vpop.f32.mrf.mxu3 }
 0x1a3   : > { %v1095_v49 = vmul.f32 %v2074_v43, %v1090_v36  ;;  %v1062_v51 = vadd.f32 %v1061_v48, %v1048_v5  ;;  %vm1100_vm8 = vweird.f32 %v2074_v43 }
 0x1a4   : > { %2077 = vrcp.f32 %v1092_v47  ;;  %v1135_v63 = vand.u32 2147483648, %v1092_v47  ;;  %v1133_v0 = vand.u32 2147483647, %v1092_v47  ;;  %vm1101_vm11 = vmor %vm1099_vm9, %vm1100_vm8  ;;  %vm1129_vm12 = vweird.f32 %v1092_v47 }
 0x1a5   : > { %v1096_v53 = vsub.f32 1.0, %v1095_v49  ;;  %v1076_v54 = vadd.f32 %v1075_v52, %v1062_v51 }
 0x1a6   : > { %v1136_v11 = vor.u32 1.1754944e-38, %v1135_v63  ;;  %vm1134_vm15 = vcmp.eq.f32.partialorder %v1133_v0, 8.507059e+37 }
 0x1a7   : > { %v2076_v44 = vpop.eup %2075  ;;  %v1783_v55 = vmul.f32 -1.442695, %v1076_v54  ;;  %v1097_v57 = vmul.f32 %v2074_v43, %v1096_v53 }
 0x1a8   : > { %v1091_v56 = vadd.f32 1.0, %v2076_v44 }
 0x1a9   : > { %2079 = vpow2.f32 %v1783_v55  ;;  %v1098_v61 = vadd.f32 %v2074_v43, %v1097_v57 }
 0x1aa   : > { %v2078_v58 = vpop.eup %2077  ;;  %2081 = vrcp.f32 %v1091_v56  ;;  %vm1114_vm1 = vweird.f32 %v1091_v56  ;;  %v1120_v23 = vand.u32 2147483648, %v1091_v56  ;;  %v1118_v26 = vand.u32 2147483647, %v1091_v56 }
 0x1ab   : > { %v1125_v59 = vmul.f32 %v2078_v58, %v1092_v47  ;;  %vm1130_vm10 = vweird.f32 %v2078_v58  ;;  %v1102_v8 = vsel %vm1101_vm11, %v2074_v43, %v1098_v61 }
 0x1ac   : > { %vm1131_vm13 = vmor %vm1129_vm12, %vm1130_vm10  ;;  %v1107_v14 = vsel %vm1104_vm14, %v1106_v10, %v1102_v8  ;;  %v1121_v31 = vor.u32 1.1754944e-38, %v1120_v23  ;;  %vm1119_vm6 = vcmp.eq.f32.partialorder %v1118_v26, 8.507059e+37 }
 0x1ad   : > { %v1126_v60 = vsub.f32 1.0, %v1125_v59 }
 0x1af   : > { %v2080_v2 = vpop.eup %2079  ;;  %v1127_v4 = vmul.f32 %v2078_v58, %v1126_v60 }
 0x1b0   : > { %v2082_v1 = vpop.eup %2081  ;;  %v1093_v6 = vadd.f32 1.0, %v2080_v2 }
 0x1b1   : > { %v1110_v7 = vmul.f32 %v2082_v1, %v1091_v56  ;;  %v1128_v9 = vadd.f32 %v2078_v58, %v1127_v4  ;;  %vm1115_vm0 = vweird.f32 %v2082_v1 }
 0x1b2   : > { %2083 = vrcp.f32 %v1093_v6  ;;  %v1150_v25 = vand.u32 2147483648, %v1093_v6  ;;  %v1148_v28 = vand.u32 2147483647, %v1093_v6  ;;  %vm1116_vm3 = vmor %vm1114_vm1, %vm1115_vm0  ;;  %vm1144_vm5 = vweird.f32 %v1093_v6 }
 0x1b3   : > { %v1111_v12 = vsub.f32 1.0, %v1110_v7  ;;  %v1132_v13 = vsel %vm1131_vm13, %v2078_v58, %v1128_v9 }
 0x1b4   : > { %v1137_v15 = vsel %vm1134_vm15, %v1136_v11, %v1132_v13  ;;  %v1151_v32 = vor.u32 1.1754944e-38, %v1150_v25  ;;  %vm1149_vm7 = vcmp.eq.f32.partialorder %v1148_v28, 8.507059e+37 }
 0x1b5   : > { %v1154_v16 = vpack.c.bf16 %v1137_v15, %v1107_v14  ;;  %v1112_v17 = vmul.f32 %v2082_v1, %v1111_v12 }
 0x1b7   : > { %1296 = vmatmul.bf16.vlgmr.msra.gmra.mxu1 %v1154_v16  ;;  %v1113_v22 = vadd.f32 %v2082_v1, %v1112_v17 }
 0x1b8   : > { %v2084_v18 = vpop.eup %2083 }
 0x1b9   : > { %v1140_v19 = vmul.f32 %v2084_v18, %v1093_v6  ;;  %vm1145_vm2 = vweird.f32 %v2084_v18  ;;  %v1117_v29 = vsel %vm1116_vm3, %v2082_v1, %v1113_v22 }
 0x1ba   : > { %vm1146_vm4 = vmor %vm1144_vm5, %vm1145_vm2  ;;  %v1122_v34 = vsel %vm1119_vm6, %v1121_v31, %v1117_v29 }
 0x1bb   : > { %v1141_v20 = vsub.f32 1.0, %v1140_v19 }
 0x1bd   : > { %v1142_v27 = vmul.f32 %v2084_v18, %v1141_v20 }
 0x1bf   : > { %v1143_v30 = vadd.f32 %v2084_v18, %v1142_v27 }
 0x1c1   : > { %v1147_v33 = vsel %vm1146_vm4, %v2084_v18, %v1143_v30 }
 0x1c2   : > { %v1152_v35 = vsel %vm1149_vm7, %v1151_v32, %v1147_v33 }
 0x1c3   : > { %v1155_v21 = vpack.c.bf16 %v1152_v35, %v1122_v34 }
 0x1c5   : > { %1310 = vmatmul.bf16.vlgmr.msra.gmra.mxu2 %v1155_v21 }
 0x234   : > { %v1297_v36 = vpop.f32.mrf.mxu1 }
 0x235   : > { %v1298_v38 = vadd.f32 %v2044_v37, %v1297_v36 }
 0x23c   : > { %v1299_v24 = vpop.f32.mrf.mxu1 }
 0x23d   : > { %v1300_v41 = vadd.f32 %v2044_v37, %v1299_v24 }
 0x248   : > { %v1311_v39 = vpop.f32.mrf.mxu2 }
 0x249   : > { %v1312_v40 = vadd.f32 %v1311_v39, %v1298_v38 }
 0x24b   : > { %1316 = vmax.xlane.f32.xlu0 %v1312_v40 }
 0x250   : > { %v1313_v42 = vpop.f32.mrf.mxu2 }
 0x251   : > { %v1314_v45 = vadd.f32 %v1313_v42, %v1300_v41 }
 0x253   : > { %1318 = vmax.xlane.f32.xlu0 %v1314_v45 }
 0x2be   : > { %v1317_v46 = vpop.xlane.xlu0 %1316 }
 0x2bf   : > { %v1320_v5 = vsub.f32 %v1312_v40, %v1317_v46 }
 0x2c1   : > { %v1322_v43 = vmul.f32 1.442695, %v1320_v5 }
 0x2c3   : > { %2085 = vpow2.f32 %v1322_v43 }
 0x2c6   : > { %v1319_v47 = vpop.xlane.xlu0 %1318 }
 0x2c7   : > { %v1321_v48 = vsub.f32 %v1314_v45, %v1319_v47 }
 0x2c9   : > { %v2086_v50 = vpop.eup %2085  ;;  %v1324_v49 = vmul.f32 1.442695, %v1321_v48 }
 0x2ca   : > { %1326 = vadd.xlane.f32.xlu1 %v2086_v50 }
 0x2cb   : > { %2087 = vpow2.f32 %v1324_v49 }
 0x2d1   : > { %v2088_v51 = vpop.eup %2087 }
 0x2d2   : > { %1328 = vadd.xlane.f32.xlu1 %v2088_v51 }
 0x33d   : > { %v1327_v52 = vpop.xlane.xlu1 %1326 }
 0x33e   : > { %2089 = vrcp.f32 %v1327_v52 }
 0x344   : > { %v2090_v54 = vpop.eup %2089 }
 0x345   : > { %v1329_v53 = vpop.xlane.xlu1 %1328  ;;  %v1332_v55 = vmul.f32 %v2090_v54, %v2086_v50 }
 0x346   : > { %2091 = vrcp.f32 %v1329_v53 }
 0x34c   : > { %v2092_v44 = vpop.eup %2091 }
 0x34d   : > { %v1333_v56 = vmul.f32 %v2092_v44, %v2088_v51 }
 0x34f   : > { %v1947_v57 = vpack.c.bf16 %v1333_v56, %v1332_v55 }
 0x351   : > { %1948 = vst [vmem:[%s362_s19] sm:$0xff] %v1947_v57  }
 0x352   : > { %2270 = shalt.err (!%p2267_p10)
}
 0x353   : > { %s2329_s11 = smov 64   ;;  %s2330_s29 = smov 4  }
 0x354   : > { %1967 = dma.vmem_to_hbm [thread:$0]  (%p2461_p5), %s1352_s15, 128, %s1354_s18, %s1339_s22, %s2329_s11, %s2329_s11, %s2330_s29  }
 0x355 PF: > { %s1368_s9 = sand.u32 1, %s2305_s24   ;;  %p2724_p12 = scmp.ge.s32.totalorder %s2317_s27, 2 }
 0x356   : > { %s1369_s14 = scalar_lea.sflag [#allocation4], %s1368_s9 }
 0x357   : > { %p1987_p13 = pnand %p2724_p12, %p2406_p6 }
 0x359   : > { %p1988_p0 = pneg %p1987_p13 }
 0x35b   : > { %2300 = dma.done.wait (%p1988_p0), %s1369_s14, 128  }
 0x35c   : > { %2302 = vsyncadd (%p1988_p0), %s1369_s14, 4294967168  ;;  %p22_p3 = scmp.ge.s32.totalorder %s2448_s23, 4   ;;  %s2725_s24 = smov %s2309_s25 }
 0x35d   : > { %s2726_s25 = smov %s2313_s26  ;;  %s2727_s26 = smov %s2457_s10 }
 0x35e   : > { %s2728_s27 = smov %s2448_s23  ;;  %24 = sbr.rel (!%p22_p3) target bundleno = 9 (0x9), region = 109 }
 0x363   :  { %1375 = vsyncpa [#allocation3], 1 }
 0x364   :  { %1377 = vsyncpa [#allocation3 + $0x1], 1 }
 0x365   :  { %1378 = vsyncpa [#allocation6], 1 }
 0x366   :  { %1379 = vsyncpa [#allocation9], 1 }
 0x367   :  { %1380 = vsyncpa [#allocation4], 1 }
 0x368   :  { %1382 = vsyncpa [#allocation4 + $0x1], 1 }

</bundles_post_ra>
